<compile_context>
chip_gen: v7x
topology: tpu7x:2x2x1
jax: 0.10.0
libtpu: 0.0.40
codegen_flags: <defaults>
</compile_context>

<pallas_src>
import functools

import jax
import jax.numpy as jnp
import numpy as np
from jax import lax
from jax.experimental import pallas as pl
from jax.experimental.pallas import tpu as pltpu

A_BITS = 8
W_BITS = 8
EPS = 1e-5
LANE = 128


def _fake_quant_asym(x, min_val, max_val, qmax):
    """Asymmetric fake quantization: map [min,max] -> [0,qmax] integers and back."""
    scale = jnp.maximum((max_val - min_val) / qmax, 1e-12)
    zp = jnp.round(min_val / scale)
    q = jnp.clip(jnp.round(x / scale - zp), 0.0, qmax)
    return (q + zp) * scale


def _asym_codes(x, min_val, max_val, qmax):
    """Integer codes c = q + zp (|c| <= qmax, exact in bf16) and the scale, such that
    fake_quant(x) == c * scale with identical rounding to _fake_quant_asym."""
    scale = jnp.maximum((max_val - min_val) / qmax, 1e-12)
    zp = jnp.round(min_val / scale)
    q = jnp.clip(jnp.round(x / scale - zp), 0.0, qmax)
    return q + zp, scale


def _pick_row_block(m, target=256):
    """Largest multiple of 8 that divides m and is <= target (fallback: m)."""
    t = min(target, m)
    t = t - (t % 8) if t % 8 else t
    for cand in range(t, 7, -8):
        if m % cand == 0:
            return cand
    return m


def _conv_stats_kernel(a_ref, w_ref, cb_ref, y_ref, st_ref):
    """Pass 1: bf16 integer-code matmul (MXU) + per-channel batch statistics.

    a_ref:  (TM, Kp)  bf16 activation codes (im2col, K zero-padded to 128)
    w_ref:  (Kp, Cp)  bf16 weight codes (grid-resident: block index constant)
    cb_ref: (2, Cp)   f32  row0 = a_scale * w_scale[c], row1 = conv bias
    y_ref:  (TM, Cp)  f32  conv output tile
    st_ref: (4, Cp)   f32  per-block stats: sum, sum_sq, min, max
    """
    # Codes are small integers, their products (<= 255*255) accumulate exactly in f32,
    # so scaling afterwards reproduces the f32 fake-quant conv bit-for-bit (mod rounding).
    acc = jnp.dot(a_ref[...], w_ref[...], preferred_element_type=jnp.float32)
    cb = cb_ref[...]
    acc = acc * cb[0:1, :] + cb[1:2, :]
    y_ref[...] = acc
    # Cross-sublane reductions run on the XLU (free slot next to the MXU push).
    st_ref[0:1, :] = jnp.sum(acc, axis=0, keepdims=True)
    st_ref[1:2, :] = jnp.sum(acc * acc, axis=0, keepdims=True)
    st_ref[2:3, :] = jnp.min(acc, axis=0, keepdims=True)
    st_ref[3:4, :] = jnp.max(acc, axis=0, keepdims=True)


def _bn_quant_relu_kernel(y_ref, p_ref, o_ref, *, qmax):
    """Pass 2 (in-place): folded BN affine + per-tensor fake-quant + ReLU.

    p_ref rows (broadcast along sublanes):
      0: a  = g * (1/o_scale)        (per channel)
      1: c  = b2 * (1/o_scale) - zp  (per channel)
      2: o_scale (scalar, broadcast)
      3: o_zp    (scalar, broadcast)
    so conv*a + c == (conv*g + b2)/o_scale - zp with no in-kernel division.
    """
    p = p_ref[...]
    t = y_ref[...] * p[0:1, :] + p[1:2, :]
    q = jnp.clip(jnp.round(t), 0.0, qmax)
    o_ref[...] = jnp.maximum((q + p[3:4, :]) * p[2:3, :], 0.0)


def quant_conv_bn_relu(x_nchw, weight_oihw, bias, gamma, beta, *, padding=1, eps=EPS,
                       row_block_target=256):
    """NCHW in/out (PyTorch convention); lane-dense [rows, channels] inside the kernels."""
    N, Cin, H, W = x_nchw.shape
    Cout, Cin_w, KH, KW = weight_oihw.shape
    assert Cin == Cin_w, "groups != 1 not supported"
    # TODO(synk): stride > 1, dilation > 1, groups > 1 not implemented.

    a_qmax = float(2 ** A_BITS - 1)
    w_qmax = float(2 ** W_BITS - 1)
    f32 = jnp.float32

    Ho = H + 2 * padding - KH + 1
    Wo = W + 2 * padding - KW + 1
    M = N * Ho * Wo
    K = KH * KW * Cin
    Kp = ((K + LANE - 1) // LANE) * LANE        # lane-dense contraction dim
    Cp = ((Cout + LANE - 1) // LANE) * LANE     # lane-dense output channels
    TM = _pick_row_block(M, row_block_target)
    n_blocks = M // TM
    # TODO(synk): ragged M (not a multiple of 8) falls back to TM == M; production shapes
    # should pad M and mask the tail rows out of the statistics.

    # ---- activation observer + fake-quant -> integer codes (cheap elementwise, wrapper) ----
    x_nhwc = jnp.transpose(x_nchw, (0, 2, 3, 1)).astype(f32)
    a_codes, a_scale = _asym_codes(x_nhwc, jnp.min(x_nhwc), jnp.max(x_nhwc), a_qmax)
    # zero-padding the CODE tensor == zero-padding the fake-quant values (code 0 <-> 0.0),
    # exactly matching F.conv2d zero padding applied after input quantization.
    a_codes = jnp.pad(a_codes, ((0, 0), (padding, padding), (padding, padding), (0, 0)))

    # ---- im2col on codes (feature order kh, kw, cin; must match weight reshape below) ----
    # TODO(synk): for large K an in-kernel shifted-window conv would avoid the KH*KW
    # im2col blow-up in HBM; kept in the wrapper here for clarity at these shapes.
    cols = [a_codes[:, kh:kh + Ho, kw:kw + Wo, :]
            for kh in range(KH) for kw in range(KW)]
    patches = jnp.concatenate(cols, axis=-1).reshape(M, K)
    patches = jnp.pad(patches, ((0, 0), (0, Kp - K))).astype(jnp.bfloat16)

    # ---- per-output-channel weight fake-quant -> integer codes (hoisted: weights are
    #      activation-independent; kept resident across the grid inside the conv kernel) ----
    w = weight_oihw.astype(f32)
    w_min = jnp.min(w, axis=(1, 2, 3), keepdims=True)
    w_max = jnp.max(w, axis=(1, 2, 3), keepdims=True)
    # TODO(synk): micronet's sign*floor(|.|+0.5) zero-point rounding and moving-average
    # observer state are approximated by round() + current-batch min/max.
    w_codes, w_scale = _asym_codes(w, w_min, w_max, w_qmax)       # (Cout,Cin,KH,KW)
    w_codes = jnp.transpose(w_codes, (2, 3, 1, 0)).reshape(K, Cout)
    w_codes = jnp.pad(w_codes, ((0, Kp - K), (0, Cp - Cout))).astype(jnp.bfloat16)
    w_scale = w_scale.reshape(Cout)

    coeffs = jnp.stack([jnp.pad(a_scale * w_scale, (0, Cp - Cout)),
                        jnp.pad(bias.astype(f32), (0, Cp - Cout))], axis=0).astype(f32)

    cparams = pltpu.CompilerParams(dimension_semantics=("parallel",),
                                   vmem_limit_bytes=32 * 1024 * 1024)

    # ---- pass 1: conv (one K-dense bf16 matmul per row block) + per-channel stats ----
    grid_a = pltpu.PrefetchScalarGridSpec(
        num_scalar_prefetch=0,
        grid=(n_blocks,),
        in_specs=[
            pl.BlockSpec((TM, Kp), lambda i: (i, 0)),
            pl.BlockSpec((Kp, Cp), lambda i: (0, 0)),      # weight-stationary
            pl.BlockSpec((2, Cp), lambda i: (0, 0)),       # scale/bias, resident
        ],
        out_specs=(
            pl.BlockSpec((TM, Cp), lambda i: (i, 0)),
            pl.BlockSpec((None, 4, Cp), lambda i: (i, 0, 0)),
        ),
    )
    conv_flat, stats = pl.pallas_call(
        _conv_stats_kernel,
        out_shape=(jax.ShapeDtypeStruct((M, Cp), f32),
                   jax.ShapeDtypeStruct((n_blocks, 4, Cp), f32)),
        grid_spec=grid_a,
        compiler_params=cparams,
    )(patches, w_codes, coeffs)

    # ---- finalize the global reductions (O(Cout) scalar math in the wrapper) ----
    ch_sum = jnp.sum(stats[:, 0, :], axis=0)
    ch_sq = jnp.sum(stats[:, 1, :], axis=0)
    ch_min = jnp.min(stats[:, 2, :], axis=0)
    ch_max = jnp.max(stats[:, 3, :], axis=0)

    mean = ch_sum / M
    var = jnp.maximum(ch_sq / M - mean * mean, 0.0)    # one-pass biased batch variance
    inv_std = lax.rsqrt(var + eps)
    gamma_p = jnp.pad(gamma.astype(f32), (0, Cp - Cout), constant_values=1.0)
    beta_p = jnp.pad(beta.astype(f32), (0, Cp - Cout))
    g = gamma_p * inv_std                               # folded BN: y = conv*g + b2
    b2 = beta_p - mean * g

    # Output-observer min/max: the per-channel BN transform is affine, so the global
    # extrema of y are attained at the per-channel conv extrema (real channels only).
    lo = jnp.minimum(ch_min * g + b2, ch_max * g + b2)[:Cout]
    hi = jnp.maximum(ch_min * g + b2, ch_max * g + b2)[:Cout]
    y_min, y_max = jnp.min(lo), jnp.max(hi)
    o_scale = jnp.maximum((y_max - y_min) / a_qmax, 1e-12)
    o_zp = jnp.round(y_min / o_scale)
    inv_s = 1.0 / o_scale

    # Pre-folded per-channel affine so pass 2 is a single FMA + round/clip/dequant/relu.
    a_fold = g * inv_s
    c_fold = b2 * inv_s - o_zp
    params = jnp.stack([a_fold, c_fold,
                        jnp.broadcast_to(o_scale, (Cp,)),
                        jnp.broadcast_to(o_zp, (Cp,))], axis=0).astype(f32)  # (4, Cp)

    # ---- pass 2: BN affine + per-tensor fake-quant + ReLU, in-place over conv_flat ----
    grid_b = pltpu.PrefetchScalarGridSpec(
        num_scalar_prefetch=0,
        grid=(n_blocks,),
        in_specs=[
            pl.BlockSpec((TM, Cp), lambda i: (i, 0)),
            pl.BlockSpec((4, Cp), lambda i: (0, 0)),
        ],
        out_specs=pl.BlockSpec((TM, Cp), lambda i: (i, 0)),
    )
    out_flat = pl.pallas_call(
        functools.partial(_bn_quant_relu_kernel, qmax=a_qmax),
        out_shape=jax.ShapeDtypeStruct((M, Cp), f32),
        grid_spec=grid_b,
        input_output_aliases={0: 0},        # reuse the conv-output HBM buffer (P8)
        compiler_params=cparams,
    )(conv_flat, params)

    out = out_flat.reshape(N, Ho, Wo, Cp)[..., :Cout]
    return jnp.transpose(out, (0, 3, 1, 2))             # back to NCHW


def _reference(x, w, b, gamma, beta, padding, eps):
    """Pure-JAX f32 reference of the same forward (NCHW)."""
    a_qmax = float(2 ** A_BITS - 1)
    w_qmax = float(2 ** W_BITS - 1)

    xq = _fake_quant_asym(x, jnp.min(x), jnp.max(x), a_qmax)
    wmin = jnp.min(w, axis=(1, 2, 3), keepdims=True)
    wmax = jnp.max(w, axis=(1, 2, 3), keepdims=True)
    wq = _fake_quant_asym(w, wmin, wmax, w_qmax)

    y = lax.conv_general_dilated(
        xq, wq, window_strides=(1, 1),
        padding=[(padding, padding), (padding, padding)],
        dimension_numbers=("NCHW", "OIHW", "NCHW"))
    y = y + b[None, :, None, None]

    mean = jnp.mean(y, axis=(0, 2, 3), keepdims=True)
    var = jnp.mean(jnp.square(y - mean), axis=(0, 2, 3), keepdims=True)
    y = (y - mean) * lax.rsqrt(var + eps)
    y = y * gamma[None, :, None, None] + beta[None, :, None, None]

    yq = _fake_quant_asym(y, jnp.min(y), jnp.max(y), a_qmax)
    return jnp.maximum(yq, 0.0)


if __name__ == "__main__":
    key = jax.random.PRNGKey(0)
    k_x, k_w, k_b = jax.random.split(key, 3)

    # Small shapes consistent with the module: NCHW input, Conv2d(4 -> 8, k=3, pad=1).
    N, Cin, H, W = 2, 4, 16, 16
    Cout, Ksz, pad = 8, 3, 1

    x = jax.random.normal(k_x, (N, Cin, H, W), jnp.float32)
    fan_in = Cin * Ksz * Ksz
    bound = 1.0 / np.sqrt(fan_in)
    weight = jax.random.uniform(k_w, (Cout, Cin, Ksz, Ksz), jnp.float32, -bound, bound)
    bias = jax.random.uniform(k_b, (Cout,), jnp.float32, -bound, bound)
    gamma = jnp.ones((Cout,), jnp.float32)   # BatchNorm2d default init
    beta = jnp.zeros((Cout,), jnp.float32)

    fwd = jax.jit(functools.partial(quant_conv_bn_relu, padding=pad))
    out = jax.block_until_ready(fwd(x, weight, bias, gamma, beta))

    ref = _reference(x, weight, bias, gamma, beta, pad, EPS)
    assert out.shape == (N, Cout, H, W)
    assert bool(jnp.all(jnp.isfinite(out)))
    err = float(jnp.max(jnp.abs(out - ref)))
    # Integer-code matmul is exact up to f32 rounding, so 5e-2 (~2 quant bins) comfortably
    # covers the rare case where that rounding flips an 8-bit quantization bin.
    assert err < 5e-2, f"mismatch vs JAX reference: {err}"

    print("KERNEL_OK")
</pallas_src>

<mosaic_0001>
module attributes {stable_mosaic.version = 11 : i64} {
  func.func @_conv_stats_kernel(%arg0: i32, %arg1: memref<256x128xbf16, #tpu.memory_space<vmem>>, %arg2: memref<128x128xbf16, #tpu.memory_space<vmem>>, %arg3: memref<2x128xf32, #tpu.memory_space<vmem>>, %arg4: memref<256x128xf32, #tpu.memory_space<vmem>>, %arg5: memref<1x4x128xf32, #tpu.memory_space<vmem>>) attributes {dimension_semantics = [#tpu.dimension_semantics<parallel>], iteration_bounds = array<i64: 2>, scalar_prefetch = 0 : i64, scratch_operands = 0 : i64, tpu.core_type = #tpu.core_type<tc>, window_params = [{transform_indices = @transform_0, window_bounds = array<i64: 256, 128>}, {pipeline_mode = #tpu.pipeline_mode<synchronous>, transform_indices = @transform_1, window_bounds = array<i64: 128, 128>}, {pipeline_mode = #tpu.pipeline_mode<synchronous>, transform_indices = @transform_2, window_bounds = array<i64: 2, 128>}, {transform_indices = @transform_3, window_bounds = array<i64: 256, 128>}, {transform_indices = @transform_4, window_bounds = array<i64: 1, 4, 128>}]} {
    %c0 = arith.constant 0 : index
    %c0_0 = arith.constant 0 : index
    %0 = vector.load %arg1[%c0, %c0_0] : memref<256x128xbf16, #tpu.memory_space<vmem>>, vector<256x128xbf16>
    %c0_1 = arith.constant 0 : index
    %c0_2 = arith.constant 0 : index
    %1 = vector.load %arg2[%c0_1, %c0_2] : memref<128x128xbf16, #tpu.memory_space<vmem>>, vector<128x128xbf16>
    %cst = arith.constant dense<0.000000e+00> : vector<256x128xf32>
    %2 = tpu.matmul %0, %1, %cst {dimension_numbers = #tpu.dot_dimension_numbers<[1], [0], [0], [1], [0, 0, 1, 1], [], []>} : vector<256x128xbf16>, vector<128x128xbf16>, vector<256x128xf32> -> vector<256x128xf32>
    %c0_3 = arith.constant 0 : index
    %c0_4 = arith.constant 0 : index
    %3 = vector.load %arg3[%c0_3, %c0_4] : memref<2x128xf32, #tpu.memory_space<vmem>>, vector<2x128xf32>
    %4 = vector.extract_strided_slice %3 {offsets = [0, 0], sizes = [1, 128], strides = [1, 1]} : vector<2x128xf32> to vector<1x128xf32>
    %5 = vector.broadcast %4 : vector<1x128xf32> to vector<256x128xf32>
    %6 = arith.mulf %2, %5 : vector<256x128xf32>
    %7 = vector.extract_strided_slice %3 {offsets = [1, 0], sizes = [1, 128], strides = [1, 1]} : vector<2x128xf32> to vector<1x128xf32>
    %8 = vector.broadcast %7 : vector<1x128xf32> to vector<256x128xf32>
    %9 = arith.addf %6, %8 : vector<256x128xf32>
    %c0_5 = arith.constant 0 : index
    %c0_6 = arith.constant 0 : index
    %10 = vector.load %arg4[%c0_5, %c0_6] : memref<256x128xf32, #tpu.memory_space<vmem>>, vector<256x128xf32>
    tpu.vector_store %arg4[%c0_5, %c0_6], %9 {strides = array<i32>} : memref<256x128xf32, #tpu.memory_space<vmem>>, vector<256x128xf32>,
    %cst_7 = arith.constant dense<0.000000e+00> : vector<128xf32>
    %11 = vector.multi_reduction <add>, %9, %cst_7 [0] : vector<256x128xf32> to vector<128xf32>
    %12 = vector.shape_cast %11 : vector<128xf32> to vector<1x128xf32>
    %c0_8 = arith.constant 0 : index
    %c0_9 = arith.constant 0 : index
    %c0_10 = arith.constant 0 : index
    %13 = vector.load %arg5[%c0_8, %c0_9, %c0_10] : memref<1x4x128xf32, #tpu.memory_space<vmem>>, vector<1x1x128xf32>
    %14 = vector.shape_cast %13 : vector<1x1x128xf32> to vector<1x128xf32>
    %15 = vector.shape_cast %12 : vector<1x128xf32> to vector<1x1x128xf32>
    tpu.vector_store %arg5[%c0_8, %c0_9, %c0_10], %15 {strides = array<i32>} : memref<1x4x128xf32, #tpu.memory_space<vmem>>, vector<1x1x128xf32>,
    %16 = arith.mulf %9, %9 : vector<256x128xf32>
    %cst_11 = arith.constant dense<0.000000e+00> : vector<128xf32>
    %17 = vector.multi_reduction <add>, %16, %cst_11 [0] : vector<256x128xf32> to vector<128xf32>
    %18 = vector.shape_cast %17 : vector<128xf32> to vector<1x128xf32>
    %c0_12 = arith.constant 0 : index
    %c1 = arith.constant 1 : index
    %c0_13 = arith.constant 0 : index
    %19 = vector.load %arg5[%c0_12, %c1, %c0_13] : memref<1x4x128xf32, #tpu.memory_space<vmem>>, vector<1x1x128xf32>
    %20 = vector.shape_cast %19 : vector<1x1x128xf32> to vector<1x128xf32>
    %21 = vector.shape_cast %18 : vector<1x128xf32> to vector<1x1x128xf32>
    tpu.vector_store %arg5[%c0_12, %c1, %c0_13], %21 {strides = array<i32>} : memref<1x4x128xf32, #tpu.memory_space<vmem>>, vector<1x1x128xf32>,
    %cst_14 = arith.constant dense<0x7F800000> : vector<128xf32>
    %22 = vector.multi_reduction <minimumf>, %9, %cst_14 [0] : vector<256x128xf32> to vector<128xf32>
    %23 = vector.shape_cast %22 : vector<128xf32> to vector<1x128xf32>
    %c0_15 = arith.constant 0 : index
    %c2 = arith.constant 2 : index
    %c0_16 = arith.constant 0 : index
    %24 = vector.load %arg5[%c0_15, %c2, %c0_16] : memref<1x4x128xf32, #tpu.memory_space<vmem>>, vector<1x1x128xf32>
    %25 = vector.shape_cast %24 : vector<1x1x128xf32> to vector<1x128xf32>
    %26 = vector.shape_cast %23 : vector<1x128xf32> to vector<1x1x128xf32>
    tpu.vector_store %arg5[%c0_15, %c2, %c0_16], %26 {strides = array<i32>} : memref<1x4x128xf32, #tpu.memory_space<vmem>>, vector<1x1x128xf32>,
    %cst_17 = arith.constant dense<0xFF800000> : vector<128xf32>
    %27 = vector.multi_reduction <maximumf>, %9, %cst_17 [0] : vector<256x128xf32> to vector<128xf32>
    %28 = vector.shape_cast %27 : vector<128xf32> to vector<1x128xf32>
    %c0_18 = arith.constant 0 : index
    %c3 = arith.constant 3 : index
    %c0_19 = arith.constant 0 : index
    %29 = vector.load %arg5[%c0_18, %c3, %c0_19] : memref<1x4x128xf32, #tpu.memory_space<vmem>>, vector<1x1x128xf32>
    %30 = vector.shape_cast %29 : vector<1x1x128xf32> to vector<1x128xf32>
    %31 = vector.shape_cast %28 : vector<1x128xf32> to vector<1x1x128xf32>
    tpu.vector_store %arg5[%c0_18, %c3, %c0_19], %31 {strides = array<i32>} : memref<1x4x128xf32, #tpu.memory_space<vmem>>, vector<1x1x128xf32>,
    return
  }
  func.func @transform_0(%arg0: i32) -> (i32, i32) {
    %c0_i32 = arith.constant 0 : i32
    %c0_i32_0 = arith.constant 0 : i32
    return %arg0, %c0_i32 : i32, i32
  }
  func.func @transform_1(%arg0: i32) -> (i32, i32) {
    %c0_i32 = arith.constant 0 : i32
    %c0_i32_0 = arith.constant 0 : i32
    %c0_i32_1 = arith.constant 0 : i32
    return %c0_i32, %c0_i32_0 : i32, i32
  }
  func.func @transform_2(%arg0: i32) -> (i32, i32) {
    %c0_i32 = arith.constant 0 : i32
    %c0_i32_0 = arith.constant 0 : i32
    %c0_i32_1 = arith.constant 0 : i32
    return %c0_i32, %c0_i32_0 : i32, i32
  }
  func.func @transform_3(%arg0: i32) -> (i32, i32) {
    %c0_i32 = arith.constant 0 : i32
    %c0_i32_0 = arith.constant 0 : i32
    return %arg0, %c0_i32 : i32, i32
  }
  func.func @transform_4(%arg0: i32) -> (i32, i32, i32) {
    %c0_i32 = arith.constant 0 : i32
    %c0_i32_0 = arith.constant 0 : i32
    %c0_i32_1 = arith.constant 0 : i32
    return %arg0, %c0_i32, %c0_i32_0 : i32, i32, i32
  }
}

module attributes {stable_mosaic.version = 11 : i64} {
  func.func @_bn_quant_relu_kernel(%arg0: i32, %arg1: memref<256x128xf32, #tpu.memory_space<vmem>>, %arg2: memref<4x128xf32, #tpu.memory_space<vmem>>, %arg3: memref<256x128xf32, #tpu.memory_space<vmem>>) attributes {dimension_semantics = [#tpu.dimension_semantics<parallel>], iteration_bounds = array<i64: 2>, scalar_prefetch = 0 : i64, scratch_operands = 0 : i64, tpu.core_type = #tpu.core_type<tc>, window_params = [{transform_indices = @transform_0, window_bounds = array<i64: 256, 128>}, {pipeline_mode = #tpu.pipeline_mode<synchronous>, transform_indices = @transform_1, window_bounds = array<i64: 4, 128>}, {transform_indices = @transform_2, window_bounds = array<i64: 256, 128>}]} {
    %c0 = arith.constant 0 : index
    %c0_0 = arith.constant 0 : index
    %0 = vector.load %arg2[%c0, %c0_0] : memref<4x128xf32, #tpu.memory_space<vmem>>, vector<4x128xf32>
    %c0_1 = arith.constant 0 : index
    %c0_2 = arith.constant 0 : index
    %1 = vector.load %arg1[%c0_1, %c0_2] : memref<256x128xf32, #tpu.memory_space<vmem>>, vector<256x128xf32>
    %2 = vector.extract_strided_slice %0 {offsets = [0, 0], sizes = [1, 128], strides = [1, 1]} : vector<4x128xf32> to vector<1x128xf32>
    %3 = vector.broadcast %2 : vector<1x128xf32> to vector<256x128xf32>
    %4 = arith.mulf %1, %3 : vector<256x128xf32>
    %5 = vector.extract_strided_slice %0 {offsets = [1, 0], sizes = [1, 128], strides = [1, 1]} : vector<4x128xf32> to vector<1x128xf32>
    %6 = vector.broadcast %5 : vector<1x128xf32> to vector<256x128xf32>
    %7 = arith.addf %4, %6 : vector<256x128xf32>
    %8 = math.roundeven %7 : vector<256x128xf32>
    %cst = arith.constant 0.000000e+00 : f32
    %cst_3 = arith.constant 2.550000e+02 : f32
    %9 = vector.broadcast %cst : f32 to vector<256x128xf32>
    %10 = arith.maximumf %9, %8 : vector<256x128xf32>
    %11 = vector.broadcast %cst_3 : f32 to vector<256x128xf32>
    %12 = arith.minimumf %11, %10 : vector<256x128xf32>
    %13 = vector.extract_strided_slice %0 {offsets = [3, 0], sizes = [1, 128], strides = [1, 1]} : vector<4x128xf32> to vector<1x128xf32>
    %14 = vector.broadcast %13 : vector<1x128xf32> to vector<256x128xf32>
    %15 = arith.addf %12, %14 : vector<256x128xf32>
    %16 = vector.extract_strided_slice %0 {offsets = [2, 0], sizes = [1, 128], strides = [1, 1]} : vector<4x128xf32> to vector<1x128xf32>
    %17 = vector.broadcast %16 : vector<1x128xf32> to vector<256x128xf32>
    %18 = arith.mulf %15, %17 : vector<256x128xf32>
    %cst_4 = arith.constant 0.000000e+00 : f32
    %19 = vector.broadcast %cst_4 : f32 to vector<256x128xf32>
    %20 = arith.maximumf %18, %19 : vector<256x128xf32>
    %c0_5 = arith.constant 0 : index
    %c0_6 = arith.constant 0 : index
    %21 = vector.load %arg3[%c0_5, %c0_6] : memref<256x128xf32, #tpu.memory_space<vmem>>, vector<256x128xf32>
    tpu.vector_store %arg3[%c0_5, %c0_6], %20 {strides = array<i32>} : memref<256x128xf32, #tpu.memory_space<vmem>>, vector<256x128xf32>,
    return
  }
  func.func @transform_0(%arg0: i32) -> (i32, i32) {
    %c0_i32 = arith.constant 0 : i32
    %c0_i32_0 = arith.constant 0 : i32
    return %arg0, %c0_i32 : i32, i32
  }
  func.func @transform_1(%arg0: i32) -> (i32, i32) {
    %c0_i32 = arith.constant 0 : i32
    %c0_i32_0 = arith.constant 0 : i32
    %c0_i32_1 = arith.constant 0 : i32
    return %c0_i32, %c0_i32_0 : i32, i32
  }
  func.func @transform_2(%arg0: i32) -> (i32, i32) {
    %c0_i32 = arith.constant 0 : i32
    %c0_i32_0 = arith.constant 0 : i32
    return %arg0, %c0_i32 : i32, i32
  }
}

</mosaic_0001>

<bundles_post_ra>
// kernel: quant_conv_bn_relu.3
= control target key start
LH: loop header
LB: loop body
LE: loop exit
PB: predicated region body
PF: predicated region fallthrough
CT: control target
= control target key end

     0   :  { %s614_s9 = smov 0   ;;  %s893_s0 = inlined_call_operand.vmem [shape: f32[512,128], index: 0, kind: input, shape index: {}, may-alias: {0,2}]   ;;  %s894_s1 = inlined_call_operand.vmem [shape: f32[4,128], index: 1, kind: input, shape index: {}]   ;;  %s895_s2 = inlined_call_operand.vmem [shape: f32[512,128], index: 2, kind: output, shape index: {}, may-alias: {0,2}]  }
   0x1 LB: > { %s540_s10 = sadd.s32 4294967295, %s597_s9   ;;  %p544_p0 = scmp.ge.s32.totalorder %s597_s9, 1  ;;  %s597_s9 = sphi %s614_s9, %s12_s9  }
   0x2   : > { %p113_p1 = scmp.lt.s32.totalorder %s597_s9, 3 }
   0x4   : > { %p114_p2 = pnand %p544_p0, %p113_p1 }
   0x5   : > { %s545_s11 = sshll.u32 (!%p114_p2), %s540_s10, 5  ;;  %v180_v0 = vlaneseq (!%p114_p2)  ;;  %v147_v2 = vld [vmem:[%s894_s1] sm:$0xf] (!%p114_p2) }
   0x6   : > { %117 = sbr.rel (%p114_p2) target bundleno = 86 (0x56), region = 28  ;;  %p136_p3 = scmp.lt.s32.totalorder (!%p114_p2), %s545_s11, 63 }
   0x7   : > { %v181_v1 = vshrl.u32 (!%p114_p2), %v180_v0, 7 }
   0x9   : > { %v182_v3 = vsub.s32 (!%p114_p2), 0, %v181_v1  ;;  %v218_v4 = vsub.s32 (!%p114_p2), 1, %v181_v1  ;;  %v350_v5 = vsub.s32 (!%p114_p2), 3, %v181_v1  ;;  %v386_v6 = vsub.s32 (!%p114_p2), 2, %v181_v1 }
   0xb   : > { %v635_v7 = vrot.slane (!%p114_p2), %v147_v2, %v182_v3  ;;  %v637_v8 = vrot.slane (!%p114_p2), %v147_v2, %v218_v4  ;;  %v646_v16 = vrot.slane (!%p114_p2), %v147_v2, %v350_v5  ;;  %v652_v21 = vrot.slane (!%p114_p2), %v147_v2, %v386_v6 }
   0xd   : > { %s897_s11 = smov (!%p136_p3, %s545_s11), 63 }
   0xe   : > { %s546_s14 = sshll.u32 %s897_s11, 3 }
   0xf   : > { %s633_s17 = scalar_lea.vmem %s893_s0, %s546_s14  ;;  %s688_s20 = scalar_lea.vmem %s895_s2, %s546_s14 }
  0x10   : > { %v148_v9 = vld [vmem:[%s633_s17] sm:$0xff]  ;;  %v149_v10 = vld [vmem:[%s633_s17 + $0x8] sm:$0xff]  ;;  %v150_v11 = vld [vmem:[%s633_s17 + $0x10] sm:$0xff] }
  0x11   : > { %v151_v12 = vld [vmem:[%s633_s17 + $0x18] sm:$0xff]  ;;  %v152_v13 = vld [vmem:[%s633_s17 + $0x20] sm:$0xff]  ;;  %v153_v14 = vld [vmem:[%s633_s17 + $0x28] sm:$0xff]  ;;  %v184_v15 = vmul.f32 %v635_v7, %v148_v9  ;;  %v185_v17 = vmul.f32 %v635_v7, %v149_v10  ;;  %v186_v18 = vmul.f32 %v635_v7, %v150_v11 }
  0x12   : > { %v154_v19 = vld [vmem:[%s633_s17 + $0x30] sm:$0xff]  ;;  %v155_v20 = vld [vmem:[%s633_s17 + $0x38] sm:$0xff]  ;;  %v187_v22 = vmul.f32 %v635_v7, %v151_v12  ;;  %v188_v23 = vmul.f32 %v635_v7, %v152_v13  ;;  %v189_v24 = vmul.f32 %v635_v7, %v153_v14  ;;  %v156_v37 = vld [vmem:[%s633_s17 + $0x40] sm:$0xff] }
  0x13   : > { %v220_v25 = vadd.f32 %v637_v8, %v184_v15  ;;  %v221_v26 = vadd.f32 %v637_v8, %v185_v17  ;;  %v222_v27 = vadd.f32 %v637_v8, %v186_v18  ;;  %v190_v28 = vmul.f32 %v635_v7, %v154_v19  ;;  %v157_v62 = vld [vmem:[%s633_s17 + $0x48] sm:$0xff]  ;;  %v158_v63 = vld [vmem:[%s633_s17 + $0x50] sm:$0xff]  ;;  %v159_v4 = vld [vmem:[%s633_s17 + $0x58] sm:$0xff] }
  0x14   : > { %v223_v29 = vadd.f32 %v637_v8, %v187_v22  ;;  %v224_v30 = vadd.f32 %v637_v8, %v188_v23  ;;  %v225_v31 = vadd.f32 %v637_v8, %v189_v24  ;;  %v191_v32 = vmul.f32 %v635_v7, %v155_v20  ;;  %v160_v5 = vld [vmem:[%s633_s17 + $0x60] sm:$0xff]  ;;  %v161_v6 = vld [vmem:[%s633_s17 + $0x68] sm:$0xff]  ;;  %v162_v13 = vld [vmem:[%s633_s17 + $0x70] sm:$0xff] }
  0x15   : > { %v551_v33 = vround.rtne.f32 %v220_v25  ;;  %v552_v34 = vround.rtne.f32 %v221_v26  ;;  %v553_v35 = vround.rtne.f32 %v222_v27  ;;  %v226_v36 = vadd.f32 %v637_v8, %v190_v28  ;;  %v163_v14 = vld [vmem:[%s633_s17 + $0x78] sm:$0xff]  ;;  %v693_v15 = vld [vmem:[%s633_s17 + $0x80] sm:$0xff]  ;;  %v696_v17 = vld [vmem:[%s633_s17 + $0x88] sm:$0xff] }
  0x16   : > { %v554_v38 = vround.rtne.f32 %v223_v29  ;;  %v555_v39 = vround.rtne.f32 %v224_v30  ;;  %v556_v40 = vround.rtne.f32 %v225_v31  ;;  %v227_v41 = vadd.f32 %v637_v8, %v191_v32  ;;  %v699_v18 = vld [vmem:[%s633_s17 + $0x90] sm:$0xff]  ;;  %v702_v19 = vld [vmem:[%s633_s17 + $0x98] sm:$0xff]  ;;  %v705_v20 = vld [vmem:[%s633_s17 + $0xa0] sm:$0xff] }
  0x17   : > { %v284_v42 = vmax.f32 %v551_v33, 0.0  ;;  %v285_v43 = vmax.f32 %v552_v34, 0.0  ;;  %v286_v44 = vmax.f32 %v553_v35, 0.0  ;;  %v557_v45 = vround.rtne.f32 %v226_v36  ;;  %v708_v22 = vld [vmem:[%s633_s17 + $0xa8] sm:$0xff]  ;;  %v711_v23 = vld [vmem:[%s633_s17 + $0xb0] sm:$0xff]  ;;  %v714_v24 = vld [vmem:[%s633_s17 + $0xb8] sm:$0xff] }
  0x18   : > { %v287_v46 = vmax.f32 %v554_v38, 0.0  ;;  %v288_v47 = vmax.f32 %v555_v39, 0.0  ;;  %v289_v48 = vmax.f32 %v556_v40, 0.0  ;;  %v558_v49 = vround.rtne.f32 %v227_v41  ;;  %v717_v25 = vld [vmem:[%s633_s17 + $0xc0] sm:$0xff]  ;;  %v720_v26 = vld [vmem:[%s633_s17 + $0xc8] sm:$0xff]  ;;  %v727_v31 = vld [vmem:[%s633_s17 + $0xd0] sm:$0xff] }
  0x19   : > { %v316_v50 = vmin.f32 %v284_v42, 255.0  ;;  %v317_v51 = vmin.f32 %v285_v43, 255.0  ;;  %v318_v52 = vmin.f32 %v286_v44, 255.0  ;;  %v192_v53 = vmul.f32 %v635_v7, %v156_v37  ;;  %v730_v32 = vld [vmem:[%s633_s17 + $0xd8] sm:$0xff]  ;;  %v733_v33 = vld [vmem:[%s633_s17 + $0xe0] sm:$0xff]  ;;  %v737_v38 = vld [vmem:[%s633_s17 + $0xe8] sm:$0xff] }
  0x1a   : > { %v319_v54 = vmin.f32 %v287_v46, 255.0  ;;  %v320_v55 = vmin.f32 %v288_v47, 255.0  ;;  %v321_v56 = vmin.f32 %v289_v48, 255.0  ;;  %v290_v57 = vmax.f32 %v557_v45, 0.0  ;;  %v740_v39 = vld [vmem:[%s633_s17 + $0xf0] sm:$0xff]  ;;  %v743_v40 = vld [vmem:[%s633_s17 + $0xf8] sm:$0xff] }
  0x1b   : > { %v352_v58 = vadd.f32 %v646_v16, %v316_v50  ;;  %v353_v59 = vadd.f32 %v646_v16, %v317_v51  ;;  %v354_v60 = vadd.f32 %v646_v16, %v318_v52  ;;  %v291_v61 = vmax.f32 %v558_v49, 0.0 }
  0x1c   : > { %v355_v0 = vadd.f32 %v646_v16, %v319_v54  ;;  %v356_v1 = vadd.f32 %v646_v16, %v320_v55  ;;  %v357_v2 = vadd.f32 %v646_v16, %v321_v56  ;;  %v322_v3 = vmin.f32 %v290_v57, 255.0 }
  0x1d   : > { %v388_v9 = vmul.f32 %v652_v21, %v352_v58  ;;  %v389_v10 = vmul.f32 %v652_v21, %v353_v59  ;;  %v390_v11 = vmul.f32 %v652_v21, %v354_v60  ;;  %v323_v12 = vmin.f32 %v291_v61, 255.0 }
  0x1e   : > { %v391_v27 = vmul.f32 %v652_v21, %v355_v0  ;;  %v392_v28 = vmul.f32 %v652_v21, %v356_v1  ;;  %v393_v29 = vmul.f32 %v652_v21, %v357_v2  ;;  %v358_v30 = vadd.f32 %v646_v16, %v322_v3 }
  0x1f   : > { %v420_v34 = vmax.f32 %v388_v9, 0.0  ;;  %v421_v35 = vmax.f32 %v389_v10, 0.0  ;;  %v422_v36 = vmax.f32 %v390_v11, 0.0  ;;  %v359_v37 = vadd.f32 %v646_v16, %v323_v12 }
  0x20   : > { %v423_v41 = vmax.f32 %v391_v27, 0.0  ;;  %v424_v42 = vmax.f32 %v392_v28, 0.0  ;;  %v425_v43 = vmax.f32 %v393_v29, 0.0  ;;  %v394_v44 = vmul.f32 %v652_v21, %v358_v30 }
  0x21   : > { %452 = vst [vmem:[%s688_s20] sm:$0xff] %v420_v34  ;;  %453 = vst [vmem:[%s688_s20 + $0x8] sm:$0xff] %v421_v35  ;;  %v395_v45 = vmul.f32 %v652_v21, %v359_v37  ;;  %v228_v46 = vadd.f32 %v637_v8, %v192_v53  ;;  %v193_v47 = vmul.f32 %v635_v7, %v157_v62 }
  0x22   : > { %454 = vst [vmem:[%s688_s20 + $0x10] sm:$0xff] %v422_v36  ;;  %v194_v48 = vmul.f32 %v635_v7, %v158_v63  ;;  %455 = vst [vmem:[%s688_s20 + $0x18] sm:$0xff] %v423_v41  ;;  %v426_v49 = vmax.f32 %v394_v44, 0.0  ;;  %v195_v50 = vmul.f32 %v635_v7, %v159_v4  ;;  %v196_v51 = vmul.f32 %v635_v7, %v160_v5 }
  0x23   : > { %456 = vst [vmem:[%s688_s20 + $0x20] sm:$0xff] %v424_v42  ;;  %457 = vst [vmem:[%s688_s20 + $0x28] sm:$0xff] %v425_v43  ;;  %v197_v52 = vmul.f32 %v635_v7, %v161_v6  ;;  %v427_v54 = vmax.f32 %v395_v45, 0.0  ;;  %v559_v55 = vround.rtne.f32 %v228_v46  ;;  %v229_v56 = vadd.f32 %v637_v8, %v193_v47 }
  0x24   : > { %v230_v53 = vadd.f32 %v637_v8, %v194_v48  ;;  %458 = vst [vmem:[%s688_s20 + $0x30] sm:$0xff] %v426_v49  ;;  %v231_v57 = vadd.f32 %v637_v8, %v195_v50  ;;  %v232_v58 = vadd.f32 %v637_v8, %v196_v51  ;;  %v198_v60 = vmul.f32 %v635_v7, %v162_v13 }
  0x25   : > { %v233_v59 = vadd.f32 %v637_v8, %v197_v52  ;;  %459 = vst [vmem:[%s688_s20 + $0x38] sm:$0xff] %v427_v54  ;;  %v292_v61 = vmax.f32 %v559_v55, 0.0  ;;  %v560_v62 = vround.rtne.f32 %v229_v56  ;;  %v199_v0 = vmul.f32 %v635_v7, %v163_v14 }
  0x26   : > { %v561_v63 = vround.rtne.f32 %v230_v53  ;;  %v562_v1 = vround.rtne.f32 %v231_v57  ;;  %v563_v2 = vround.rtne.f32 %v232_v58  ;;  %v234_v4 = vadd.f32 %v637_v8, %v198_v60 }
  0x27   : > { %v564_v3 = vround.rtne.f32 %v233_v59  ;;  %v324_v5 = vmin.f32 %v292_v61, 255.0  ;;  %v293_v6 = vmax.f32 %v560_v62, 0.0  ;;  %v235_v10 = vadd.f32 %v637_v8, %v199_v0 }
  0x28   : > { %v294_v9 = vmax.f32 %v561_v63, 0.0  ;;  %v295_v11 = vmax.f32 %v562_v1, 0.0  ;;  %v296_v12 = vmax.f32 %v563_v2, 0.0  ;;  %v565_v13 = vround.rtne.f32 %v234_v4 }
  0x29   : > { %v297_v27 = vmax.f32 %v564_v3, 0.0  ;;  %v360_v28 = vadd.f32 %v646_v16, %v324_v5  ;;  %v325_v29 = vmin.f32 %v293_v6, 255.0  ;;  %v566_v34 = vround.rtne.f32 %v235_v10 }
  0x2a   : > { %v326_v30 = vmin.f32 %v294_v9, 255.0  ;;  %v327_v14 = vmin.f32 %v295_v11, 255.0  ;;  %v328_v35 = vmin.f32 %v296_v12, 255.0  ;;  %v298_v37 = vmax.f32 %v565_v13, 0.0 }
  0x2b   : > { %v329_v36 = vmin.f32 %v297_v27, 255.0  ;;  %v396_v41 = vmul.f32 %v652_v21, %v360_v28  ;;  %v361_v42 = vadd.f32 %v646_v16, %v325_v29  ;;  %v299_v44 = vmax.f32 %v566_v34, 0.0 }
  0x2c   : > { %v362_v43 = vadd.f32 %v646_v16, %v326_v30  ;;  %v363_v45 = vadd.f32 %v646_v16, %v327_v14  ;;  %v364_v46 = vadd.f32 %v646_v16, %v328_v35  ;;  %v330_v48 = vmin.f32 %v298_v37, 255.0 }
  0x2d   : > { %v365_v47 = vadd.f32 %v646_v16, %v329_v36  ;;  %v428_v49 = vmax.f32 %v396_v41, 0.0  ;;  %v397_v50 = vmul.f32 %v652_v21, %v361_v42  ;;  %v331_v52 = vmin.f32 %v299_v44, 255.0 }
  0x2e   : > { %v398_v51 = vmul.f32 %v652_v21, %v362_v43  ;;  %v399_v54 = vmul.f32 %v652_v21, %v363_v45  ;;  %v400_v55 = vmul.f32 %v652_v21, %v364_v46  ;;  %v366_v53 = vadd.f32 %v646_v16, %v330_v48 }
  0x2f   : > { %v401_v56 = vmul.f32 %v652_v21, %v365_v47  ;;  %460 = vst [vmem:[%s688_s20 + $0x40] sm:$0xff] %v428_v49  ;;  %v429_v57 = vmax.f32 %v397_v50, 0.0  ;;  %v367_v59 = vadd.f32 %v646_v16, %v331_v52  ;;  %v200_v60 = vmul.f32 %v635_v7, %v693_v15 }
  0x30   : > { %v430_v58 = vmax.f32 %v398_v51, 0.0  ;;  %v431_v61 = vmax.f32 %v399_v54, 0.0  ;;  %v432_v62 = vmax.f32 %v400_v55, 0.0  ;;  %v402_v0 = vmul.f32 %v652_v21, %v366_v53 }
  0x31   : > { %v433_v63 = vmax.f32 %v401_v56, 0.0  ;;  %461 = vst [vmem:[%s688_s20 + $0x48] sm:$0xff] %v429_v57  ;;  %v403_v1 = vmul.f32 %v652_v21, %v367_v59  ;;  %v236_v2 = vadd.f32 %v637_v8, %v200_v60  ;;  %v201_v3 = vmul.f32 %v635_v7, %v696_v17 }
  0x32   : > { %462 = vst [vmem:[%s688_s20 + $0x50] sm:$0xff] %v430_v58  ;;  %v202_v4 = vmul.f32 %v635_v7, %v699_v18  ;;  %463 = vst [vmem:[%s688_s20 + $0x58] sm:$0xff] %v431_v61  ;;  %v434_v15 = vmax.f32 %v402_v0, 0.0  ;;  %v203_v5 = vmul.f32 %v635_v7, %v702_v19  ;;  %v204_v6 = vmul.f32 %v635_v7, %v705_v20 }
  0x33   : > { %464 = vst [vmem:[%s688_s20 + $0x60] sm:$0xff] %v432_v62  ;;  %465 = vst [vmem:[%s688_s20 + $0x68] sm:$0xff] %v433_v63  ;;  %v205_v9 = vmul.f32 %v635_v7, %v708_v22  ;;  %v435_v10 = vmax.f32 %v403_v1, 0.0  ;;  %v567_v11 = vround.rtne.f32 %v236_v2  ;;  %v237_v17 = vadd.f32 %v637_v8, %v201_v3 }
  0x34   : > { %v238_v18 = vadd.f32 %v637_v8, %v202_v4  ;;  %466 = vst [vmem:[%s688_s20 + $0x70] sm:$0xff] %v434_v15  ;;  %v239_v12 = vadd.f32 %v637_v8, %v203_v5  ;;  %v240_v27 = vadd.f32 %v637_v8, %v204_v6  ;;  %v206_v19 = vmul.f32 %v635_v7, %v711_v23 }
  0x35   : > { %v241_v13 = vadd.f32 %v637_v8, %v205_v9  ;;  %467 = vst [vmem:[%s688_s20 + $0x78] sm:$0xff] %v435_v10  ;;  %v300_v20 = vmax.f32 %v567_v11, 0.0  ;;  %v568_v28 = vround.rtne.f32 %v237_v17  ;;  %v207_v29 = vmul.f32 %v635_v7, %v714_v24 }
  0x36   : > { %v569_v22 = vround.rtne.f32 %v238_v18  ;;  %v570_v30 = vround.rtne.f32 %v239_v12  ;;  %v571_v34 = vround.rtne.f32 %v240_v27  ;;  %v242_v35 = vadd.f32 %v637_v8, %v206_v19 }
  0x37   : > { %v572_v14 = vround.rtne.f32 %v241_v13  ;;  %v332_v36 = vmin.f32 %v300_v20, 255.0  ;;  %v301_v37 = vmax.f32 %v568_v28, 0.0  ;;  %v243_v42 = vadd.f32 %v637_v8, %v207_v29 }
  0x38   : > { %v302_v41 = vmax.f32 %v569_v22, 0.0  ;;  %v303_v43 = vmax.f32 %v570_v30, 0.0  ;;  %v304_v44 = vmax.f32 %v571_v34, 0.0  ;;  %v573_v45 = vround.rtne.f32 %v242_v35 }
  0x39   : > { %v305_v23 = vmax.f32 %v572_v14, 0.0  ;;  %v368_v46 = vadd.f32 %v646_v16, %v332_v36  ;;  %v333_v47 = vmin.f32 %v301_v37, 255.0  ;;  %v574_v49 = vround.rtne.f32 %v243_v42 }
  0x3a   : > { %v334_v48 = vmin.f32 %v302_v41, 255.0  ;;  %v335_v24 = vmin.f32 %v303_v43, 255.0  ;;  %v336_v50 = vmin.f32 %v304_v44, 255.0  ;;  %v306_v52 = vmax.f32 %v573_v45, 0.0 }
  0x3b   : > { %v337_v51 = vmin.f32 %v305_v23, 255.0  ;;  %v404_v54 = vmul.f32 %v652_v21, %v368_v46  ;;  %v369_v55 = vadd.f32 %v646_v16, %v333_v47  ;;  %v307_v53 = vmax.f32 %v574_v49, 0.0 }
  0x3c   : > { %v370_v56 = vadd.f32 %v646_v16, %v334_v48  ;;  %v371_v57 = vadd.f32 %v646_v16, %v335_v24  ;;  %v372_v58 = vadd.f32 %v646_v16, %v336_v50  ;;  %v338_v60 = vmin.f32 %v306_v52, 255.0 }
  0x3d   : > { %v373_v59 = vadd.f32 %v646_v16, %v337_v51  ;;  %v436_v61 = vmax.f32 %v404_v54, 0.0  ;;  %v405_v62 = vmul.f32 %v652_v21, %v369_v55  ;;  %v339_v0 = vmin.f32 %v307_v53, 255.0 }
  0x3e   : > { %v406_v63 = vmul.f32 %v652_v21, %v370_v56  ;;  %v407_v1 = vmul.f32 %v652_v21, %v371_v57  ;;  %v408_v2 = vmul.f32 %v652_v21, %v372_v58  ;;  %v374_v4 = vadd.f32 %v646_v16, %v338_v60 }
  0x3f   : > { %v409_v3 = vmul.f32 %v652_v21, %v373_v59  ;;  %468 = vst [vmem:[%s688_s20 + $0x80] sm:$0xff] %v436_v61  ;;  %v437_v15 = vmax.f32 %v405_v62, 0.0  ;;  %v375_v6 = vadd.f32 %v646_v16, %v339_v0  ;;  %v208_v9 = vmul.f32 %v635_v7, %v717_v25 }
  0x40   : > { %v438_v5 = vmax.f32 %v406_v63, 0.0  ;;  %v439_v10 = vmax.f32 %v407_v1, 0.0  ;;  %v440_v11 = vmax.f32 %v408_v2, 0.0  ;;  %v410_v18 = vmul.f32 %v652_v21, %v374_v4 }
  0x41   : > { %v441_v17 = vmax.f32 %v409_v3, 0.0  ;;  %469 = vst [vmem:[%s688_s20 + $0x88] sm:$0xff] %v437_v15  ;;  %v411_v12 = vmul.f32 %v652_v21, %v375_v6  ;;  %v244_v27 = vadd.f32 %v637_v8, %v208_v9  ;;  %v209_v13 = vmul.f32 %v635_v7, %v720_v26 }
  0x42   : > { %470 = vst [vmem:[%s688_s20 + $0x90] sm:$0xff] %v438_v5  ;;  %v210_v19 = vmul.f32 %v635_v7, %v727_v31  ;;  %471 = vst [vmem:[%s688_s20 + $0x98] sm:$0xff] %v439_v10  ;;  %v442_v25 = vmax.f32 %v410_v18, 0.0  ;;  %v211_v20 = vmul.f32 %v635_v7, %v730_v32  ;;  %v212_v28 = vmul.f32 %v635_v7, %v733_v33 }
  0x43   : > { %472 = vst [vmem:[%s688_s20 + $0xa0] sm:$0xff] %v440_v11  ;;  %473 = vst [vmem:[%s688_s20 + $0xa8] sm:$0xff] %v441_v17  ;;  %v213_v22 = vmul.f32 %v635_v7, %v737_v38  ;;  %v443_v29 = vmax.f32 %v411_v12, 0.0  ;;  %v575_v30 = vround.rtne.f32 %v244_v27  ;;  %v245_v26 = vadd.f32 %v637_v8, %v209_v13 }
  0x44   : > { %v246_v31 = vadd.f32 %v637_v8, %v210_v19  ;;  %474 = vst [vmem:[%s688_s20 + $0xb0] sm:$0xff] %v442_v25  ;;  %v247_v34 = vadd.f32 %v637_v8, %v211_v20  ;;  %v248_v14 = vadd.f32 %v637_v8, %v212_v28  ;;  %v214_v32 = vmul.f32 %v635_v7, %v740_v39 }
  0x45   : > { %v249_v35 = vadd.f32 %v637_v8, %v213_v22  ;;  %475 = vst [vmem:[%s688_s20 + $0xb8] sm:$0xff] %v443_v29  ;;  %v308_v33 = vmax.f32 %v575_v30, 0.0  ;;  %v576_v36 = vround.rtne.f32 %v245_v26  ;;  %v215_v37 = vmul.f32 %v635_v7, %v743_v40 }
  0x46   : > { %v577_v38 = vround.rtne.f32 %v246_v31  ;;  %v578_v41 = vround.rtne.f32 %v247_v34  ;;  %v579_v42 = vround.rtne.f32 %v248_v14  ;;  %v250_v44 = vadd.f32 %v637_v8, %v214_v32 }
  0x47   : > { %v580_v43 = vround.rtne.f32 %v249_v35  ;;  %v340_v23 = vmin.f32 %v308_v33, 255.0  ;;  %v309_v45 = vmax.f32 %v576_v36, 0.0  ;;  %v251_v47 = vadd.f32 %v637_v8, %v215_v37 }
  0x48   : > { %v310_v46 = vmax.f32 %v577_v38, 0.0  ;;  %v311_v48 = vmax.f32 %v578_v41, 0.0  ;;  %v312_v49 = vmax.f32 %v579_v42, 0.0  ;;  %v581_v24 = vround.rtne.f32 %v250_v44 }
  0x49   : > { %v313_v39 = vmax.f32 %v580_v43, 0.0  ;;  %v376_v50 = vadd.f32 %v646_v16, %v340_v23  ;;  %v341_v51 = vmin.f32 %v309_v45, 255.0  ;;  %v582_v54 = vround.rtne.f32 %v251_v47 }
  0x4a   : > { %v342_v52 = vmin.f32 %v310_v46, 255.0  ;;  %v343_v7 = vmin.f32 %v311_v48, 255.0  ;;  %v344_v40 = vmin.f32 %v312_v49, 255.0  ;;  %v314_v56 = vmax.f32 %v581_v24, 0.0 }
  0x4b   : > { %v345_v55 = vmin.f32 %v313_v39, 255.0  ;;  %v412_v53 = vmul.f32 %v652_v21, %v376_v50  ;;  %v377_v57 = vadd.f32 %v646_v16, %v341_v51  ;;  %v315_v58 = vmax.f32 %v582_v54, 0.0 }
  0x4c   : > { %v378_v8 = vadd.f32 %v646_v16, %v342_v52  ;;  %v379_v59 = vadd.f32 %v646_v16, %v343_v7  ;;  %v380_v60 = vadd.f32 %v646_v16, %v344_v40  ;;  %v346_v62 = vmin.f32 %v314_v56, 255.0 }
  0x4d   : > { %v381_v61 = vadd.f32 %v646_v16, %v345_v55  ;;  %v444_v63 = vmax.f32 %v412_v53, 0.0  ;;  %v413_v0 = vmul.f32 %v652_v21, %v377_v57  ;;  %v347_v2 = vmin.f32 %v315_v58, 255.0 }
  0x4e   : > { %v414_v1 = vmul.f32 %v652_v21, %v378_v8  ;;  %v415_v3 = vmul.f32 %v652_v21, %v379_v59  ;;  %v416_v4 = vmul.f32 %v652_v21, %v380_v60  ;;  %v382_v5 = vadd.f32 %v646_v16, %v346_v62 }
  0x4f   : > { %v417_v15 = vmul.f32 %v652_v21, %v381_v61  ;;  %476 = vst [vmem:[%s688_s20 + $0xc0] sm:$0xff] %v444_v63  ;;  %v445_v6 = vmax.f32 %v413_v0, 0.0  ;;  %v383_v10 = vadd.f32 %v646_v16, %v347_v2 }
  0x50   : > { %v446_v9 = vmax.f32 %v414_v1, 0.0  ;;  %v447_v11 = vmax.f32 %v415_v3, 0.0  ;;  %v448_v17 = vmax.f32 %v416_v4, 0.0  ;;  %v418_v12 = vmul.f32 %v652_v21, %v382_v5 }
  0x51   : > { %v449_v18 = vmax.f32 %v417_v15, 0.0  ;;  %477 = vst [vmem:[%s688_s20 + $0xc8] sm:$0xff] %v445_v6  ;;  %v419_v27 = vmul.f32 %v652_v21, %v383_v10 }
  0x52   : > { %478 = vst [vmem:[%s688_s20 + $0xd0] sm:$0xff] %v446_v9  ;;  %479 = vst [vmem:[%s688_s20 + $0xd8] sm:$0xff] %v447_v11  ;;  %v450_v13 = vmax.f32 %v418_v12, 0.0 }
  0x53   : > { %480 = vst [vmem:[%s688_s20 + $0xe0] sm:$0xff] %v448_v17  ;;  %481 = vst [vmem:[%s688_s20 + $0xe8] sm:$0xff] %v449_v18  ;;  %v451_v19 = vmax.f32 %v419_v27, 0.0 }
  0x54   : > { %482 = vst [vmem:[%s688_s20 + $0xf0] sm:$0xff] %v450_v13 }
  0x55   : > { %483 = vst [vmem:[%s688_s20 + $0xf8] sm:$0xff] %v451_v19 }
  0x56 PF: > { %s12_s9 = sadd.s32 1, %s597_s9  }
  0x57   : > { %p9_p4 = scmp.ge.s32.totalorder %s12_s9, 4  }
  0x59   :  { %11 = sbr.rel (!%p9_p4) target bundleno = 1 (0x1), region = 58 }

// kernel: quant_conv_bn_relu.2
= control target key start
LH: loop header
LB: loop body
LE: loop exit
PB: predicated region body
PF: predicated region fallthrough
CT: control target
= control target key end

     0   :  { %s1131_s15 = smov 0   ;;  %s1500_s0 = inlined_call_operand.vmem [shape: bf16[512,128], index: 0, kind: input, shape index: {}]   ;;  %s1501_s1 = inlined_call_operand.vmem [shape: bf16[128,128], index: 1, kind: input, shape index: {}]   ;;  %s1502_s2 = inlined_call_operand.vmem [shape: f32[2,128], index: 2, kind: input, shape index: {}]   ;;  %s1503_s3 = inlined_call_operand.vmem [shape: f32[512,128], index: 3, kind: output, shape index: {0}]   ;;  %s1504_s4 = inlined_call_operand.vmem [shape: f32[2,4,128], index: 4, kind: output, shape index: {1}]  }
   0x1 LB: > { %s1137_s16 = sadd.s32 4294967295, %s1104_s15   ;;  %p946_p0 = scmp.ge.s32.totalorder %s1104_s15, 1  ;;  %s1104_s15 = sphi %s1131_s15, %s15_s15  }
   0x2   : > { %p166_p1 = scmp.lt.s32.totalorder %s1104_s15, 3 }
   0x4   : > { %p167_p2 = pnand %p946_p0, %p166_p1 }
   0x5   : > { %v1074_v0 = vld [vmem:[%s1501_s1] sm:$0xff] (!%p167_p2)   ;;  %s947_s19 = sshll.u32 (!%p167_p2), %s1137_s16, 5  ;;  %v1075_v1 = vld [vmem:[%s1501_s1 + $0x8] sm:$0xff] (!%p167_p2)   ;;  %v1076_v2 = vld [vmem:[%s1501_s1 + $0x10] sm:$0xff] (!%p167_p2)   ;;  %v567_v24 = vlaneseq (!%p167_p2)  ;;  %p208_p4 = scmp.lt.s32.totalorder (!%p167_p2), %s1137_s16, 1 }
   0x6   : > { %170 = sbr.rel (%p167_p2) target bundleno = 338 (0x152), region = 32  ;;  %p197_p3 = scmp.lt.s32.totalorder (!%p167_p2), %s947_s19, 63  ;;  %1002 = vmatprep.subr.bf16.mxu0 (!%p167_p2), %v1074_v0  ;;  %1050 = vmatprep.subr.bf16.mxu1 (!%p167_p2), %v1074_v0  ;;  %v1077_v3 = vld [vmem:[%s1501_s1 + $0x18] sm:$0xff] (!%p167_p2)   ;;  %v1078_v6 = vld [vmem:[%s1501_s1 + $0x20] sm:$0xff] (!%p167_p2)   ;;  %v1079_v7 = vld [vmem:[%s1501_s1 + $0x28] sm:$0xff] (!%p167_p2)  }
   0x7   : > { %1003 = vmatpush3.bf16.msra.mxu0 (!%p167_p2), %v1074_v0  ;;  %1058 = vmatpush3.bf16.msra.mxu1 (!%p167_p2), %v1074_v0  ;;  %v1080_v8 = vld [vmem:[%s1501_s1 + $0x30] sm:$0xff] (!%p167_p2)   ;;  %v1081_v9 = vld [vmem:[%s1501_s1 + $0x38] sm:$0xff] (!%p167_p2)   ;;  %v568_v25 = vshrl.u32 (!%p167_p2), %v567_v24, 7  ;;  %v566_v27 = vld [vmem:[%s1502_s2] sm:$0x3] (!%p167_p2) }
   0x8   : > { %1004 = vmatprep.subr.bf16.mxu0 (!%p167_p2), %v1075_v1  ;;  %1051 = vmatprep.subr.bf16.mxu1 (!%p167_p2), %v1075_v1 }
   0x9   : > { %v569_v26 = vsub.s32 (!%p167_p2), 0, %v568_v25  ;;  %v605_v28 = vsub.s32 (!%p167_p2), 1, %v568_v25 }
   0xb   : > { %1005 = vmatpush3.bf16.msra.mxu0 (!%p167_p2), %v1075_v1  ;;  %1059 = vmatpush3.bf16.msra.mxu1 (!%p167_p2), %v1075_v1  ;;  %v1193_v29 = vrot.slane (!%p167_p2), %v566_v27, %v569_v26  ;;  %v1196_v30 = vrot.slane (!%p167_p2), %v566_v27, %v605_v28 }
   0xc   : > { %1006 = vmatprep.subr.bf16.mxu0 (!%p167_p2), %v1076_v2  ;;  %1052 = vmatprep.subr.bf16.mxu1 (!%p167_p2), %v1076_v2 }
   0xd   : > { %s1506_s19 = smov (!%p197_p3, %s947_s19), 63  ;;  %s1508_s16 = smov (!%p208_p4, %s1137_s16), 1 }
   0xe   : > { %s948_s24 = sshll.u32 %s1506_s19, 2  ;;  %s950_s14 = sshll.u32 %s1506_s19, 3 }
   0xf   : > { %s1157_s27 = scalar_lea.vmem %s1500_s0, %s948_s24  ;;  %1007 = vmatpush3.bf16.msra.mxu0 %v1076_v2  ;;  %1060 = vmatpush3.bf16.msra.mxu1 %v1076_v2  ;;  %s1203_s20 = scalar_lea.vmem %s1503_s3, %s950_s14 }
  0x10   : > { %v1082_v4 = vld [vmem:[%s1157_s27] sm:$0xff]   ;;  %1008 = vmatprep.subr.bf16.mxu0 %v1077_v3  ;;  %1053 = vmatprep.subr.bf16.mxu1 %v1077_v3  ;;  %v1083_v10 = vld [vmem:[%s1157_s27 + $0x8] sm:$0xff]   ;;  %v1084_v12 = vld [vmem:[%s1157_s27 + $0x10] sm:$0xff]   ;;  %s951_s19 = sshll.u32 %s1508_s16, 2 }
  0x11   : > { %1018 = vmatprep.mubr.bf16.mxu0 %v1082_v4  ;;  %v1085_v5 = vld [vmem:[%s1157_s27 + $0x40] sm:$0xff]   ;;  %v1087_v11 = vld [vmem:[%s1157_s27 + $0x48] sm:$0xff]   ;;  %v1089_v13 = vld [vmem:[%s1157_s27 + $0x50] sm:$0xff]   ;;  %s211_s16 = scalar_lea.vmem %s1504_s4, %s951_s19 }
  0x12   : > { %1034 = vmatprep.mubr.bf16.mxu1 %v1085_v5  ;;  %v1086_v14 = vld [vmem:[%s1157_s27 + $0x18] sm:$0xff]   ;;  %v1088_v16 = vld [vmem:[%s1157_s27 + $0x20] sm:$0xff]   ;;  %v1090_v18 = vld [vmem:[%s1157_s27 + $0x28] sm:$0xff]  }
  0x13   : > { %1009 = vmatpush3.bf16.msra.mxu0 %v1077_v3  ;;  %1061 = vmatpush3.bf16.msra.mxu1 %v1077_v3  ;;  %v1091_v15 = vld [vmem:[%s1157_s27 + $0x58] sm:$0xff]   ;;  %v1093_v17 = vld [vmem:[%s1157_s27 + $0x60] sm:$0xff]   ;;  %v1095_v19 = vld [vmem:[%s1157_s27 + $0x68] sm:$0xff]  }
  0x14   : > { %1010 = vmatprep.subr.bf16.mxu0 %v1078_v6  ;;  %1054 = vmatprep.subr.bf16.mxu1 %v1078_v6  ;;  %v1092_v20 = vld [vmem:[%s1157_s27 + $0x30] sm:$0xff]   ;;  %v1094_v22 = vld [vmem:[%s1157_s27 + $0x38] sm:$0xff]  }
  0x15   : > { %v1096_v21 = vld [vmem:[%s1157_s27 + $0x70] sm:$0xff]   ;;  %v1097_v23 = vld [vmem:[%s1157_s27 + $0x78] sm:$0xff]  }
  0x17   : > { %1011 = vmatpush3.bf16.msra.mxu0 %v1078_v6  ;;  %1062 = vmatpush3.bf16.msra.mxu1 %v1078_v6 }
  0x18   : > { %1012 = vmatprep.subr.bf16.mxu0 %v1079_v7  ;;  %1055 = vmatprep.subr.bf16.mxu1 %v1079_v7 }
  0x1b   : > { %1013 = vmatpush3.bf16.msra.mxu0 %v1079_v7  ;;  %1063 = vmatpush3.bf16.msra.mxu1 %v1079_v7 }
  0x1c   : > { %1014 = vmatprep.subr.bf16.mxu0 %v1080_v8  ;;  %1056 = vmatprep.subr.bf16.mxu1 %v1080_v8 }
  0x1f   : > { %1015 = vmatpush3.bf16.msra.mxu0 %v1080_v8  ;;  %1064 = vmatpush3.bf16.msra.mxu1 %v1080_v8 }
  0x20   : > { %1016 = vmatprep.subr.bf16.mxu0 %v1081_v9  ;;  %1057 = vmatprep.subr.bf16.mxu1 %v1081_v9 }
  0x23   : > { %1017 = vmatpush3.bf16.msra.mxu0 %v1081_v9  ;;  %1065 = vmatpush3.bf16.msra.mxu1 %v1081_v9 }
  0x26   : > { %1019 = vmatmul.mubr.bf16.vlgmr.msra.gmra.mrb[0].mxu0 %v1083_v10  ;;  %1035 = vmatmul.mubr.bf16.vlgmr.msra.gmra.mrb[0].mxu1 %v1087_v11 }
  0x27   : > { %1022 = vmatprep.mubr.bf16.mxu0 %v1084_v12  ;;  %1038 = vmatprep.mubr.bf16.mxu1 %v1089_v13 }
  0x2e   : > { %1023 = vmatmul.mubr.bf16.gmra.mrb[4].mxu0 %v1086_v14  ;;  %1039 = vmatmul.mubr.bf16.gmra.mrb[4].mxu1 %v1091_v15 }
  0x2f   : > { %1026 = vmatprep.mubr.bf16.mxu0 %v1088_v16  ;;  %1042 = vmatprep.mubr.bf16.mxu1 %v1093_v17 }
  0x36   : > { %1027 = vmatmul.mubr.bf16.gmra.mrb[8].mxu0 %v1090_v18  ;;  %1043 = vmatmul.mubr.bf16.gmra.mrb[8].mxu1 %v1095_v19 }
  0x37   : > { %1030 = vmatprep.mubr.bf16.mxu0 %v1092_v20  ;;  %1046 = vmatprep.mubr.bf16.mxu1 %v1096_v21 }
  0x3e   : > { %1031 = vmatmul.mubr.bf16.gmra.mrb[12].mxu0 %v1094_v22  ;;  %1047 = vmatmul.mubr.bf16.gmra.mrb[12].mxu1 %v1097_v23 }
  0xf9   : > { %v1020_v31 = vpop.f32.mrb[0].mxu0  ;;  %v1036_v32 = vpop.f32.mrb[0].mxu1 }
  0xfa   : > { %v573_v33 = vmul.f32 %v1020_v31, %v1193_v29  ;;  %v439_v34 = vpop.f32.mrb[1].mxu0  ;;  %v589_v35 = vmul.f32 %v1036_v32, %v1193_v29  ;;  %v503_v36 = vpop.f32.mrb[1].mxu1 }
  0xfb   : > { %v571_v37 = vmul.f32 %v1193_v29, %v439_v34  ;;  %v1021_v38 = vpop.f32.mrb[2].mxu0  ;;  %v587_v39 = vmul.f32 %v1193_v29, %v503_v36  ;;  %v1037_v40 = vpop.f32.mrb[2].mxu1 }
  0xfc   : > { %v1208_v41 = vadd.f32 %v1196_v30, %v573_v33  ;;  %v574_v42 = vmul.f32 %v1021_v38, %v1193_v29  ;;  %v442_v43 = vpop.f32.mrb[3].mxu0  ;;  %v1212_v44 = vadd.f32 %v1196_v30, %v589_v35  ;;  %v590_v45 = vmul.f32 %v1037_v40, %v1193_v29  ;;  %v506_v46 = vpop.f32.mrb[3].mxu1 }
  0xfd   : > { %v1216_v47 = vadd.f32 %v1196_v30, %v571_v37  ;;  %v572_v48 = vmul.f32 %v1193_v29, %v442_v43  ;;  %v1220_v49 = vadd.f32 %v1196_v30, %v587_v39  ;;  %v588_v50 = vmul.f32 %v1193_v29, %v506_v46 }
  0xfe   : > { %641 = vst [vmem:[%s1203_s20 + $0x10] sm:$0xff] %v1208_v41  ;;  %v1226_v51 = vadd.f32 %v1196_v30, %v574_v42  ;;  %657 = vst [vmem:[%s1203_s20 + $0x90] sm:$0xff] %v1212_v44  ;;  %v1231_v52 = vadd.f32 %v1196_v30, %v590_v45  ;;  %v711_v60 = vmul.f32 %v1208_v41, %v1208_v41 }
  0xff   : > { %639 = vst [vmem:[%s1203_s20] sm:$0xff] %v1216_v47  ;;  %v1236_v53 = vadd.f32 %v1196_v30, %v572_v48  ;;  %655 = vst [vmem:[%s1203_s20 + $0x80] sm:$0xff] %v1220_v49  ;;  %v1241_v54 = vadd.f32 %v1196_v30, %v588_v50  ;;  %v709_v55 = vmul.f32 %v1216_v47, %v1216_v47 }
 0x100   : > { %642 = vst [vmem:[%s1203_s20 + $0x18] sm:$0xff] %v1226_v51  ;;  %658 = vst [vmem:[%s1203_s20 + $0x98] sm:$0xff] %v1231_v52  ;;  %v712_v1 = vmul.f32 %v1226_v51, %v1226_v51 }
 0x101   : > { %640 = vst [vmem:[%s1203_s20 + $0x8] sm:$0xff] %v1236_v53  ;;  %v671_v56 = vadd.f32 %v1236_v53, %v1216_v47  ;;  %v710_v57 = vmul.f32 %v1236_v53, %v1236_v53  ;;  %v1024_v58 = vpop.f32.mrb[4].mxu0  ;;  %656 = vst [vmem:[%s1203_s20 + $0x88] sm:$0xff] %v1241_v54  ;;  %v1040_v59 = vpop.f32.mrb[4].mxu1 }
 0x102   : > { %v577_v61 = vmul.f32 %v1024_v58, %v1193_v29  ;;  %v455_v62 = vpop.f32.mrb[5].mxu0  ;;  %v593_v63 = vmul.f32 %v1040_v59, %v1193_v29  ;;  %v519_v0 = vpop.f32.mrb[5].mxu1 }
 0x103   : > { %v672_v2 = vadd.f32 %v671_v56, %v1208_v41  ;;  %v741_v3 = vadd.f32 %v710_v57, %v709_v55  ;;  %v575_v4 = vmul.f32 %v1193_v29, %v455_v62  ;;  %v1025_v5 = vpop.f32.mrb[6].mxu0  ;;  %v1041_v6 = vpop.f32.mrb[6].mxu1  ;;  %v591_v11 = vmul.f32 %v1193_v29, %v519_v0 }
 0x104   : > { %v613_v7 = vadd.f32 %v1196_v30, %v577_v61  ;;  %v578_v8 = vmul.f32 %v1025_v5, %v1193_v29  ;;  %v458_v9 = vpop.f32.mrb[7].mxu0  ;;  %v1268_v10 = vadd.f32 %v1196_v30, %v593_v63  ;;  %v522_v12 = vpop.f32.mrb[7].mxu1  ;;  %v594_v20 = vmul.f32 %v1041_v6, %v1193_v29 }
 0x105   : > { %v742_v13 = vadd.f32 %v741_v3, %v711_v60  ;;  %v611_v14 = vadd.f32 %v1196_v30, %v575_v4  ;;  %v673_v15 = vadd.f32 %v672_v2, %v1226_v51  ;;  %v576_v16 = vmul.f32 %v1193_v29, %v458_v9 }
 0x106   : > { %645 = vst [vmem:[%s1203_s20 + $0x30] sm:$0xff] %v613_v7  ;;  %v781_v17 = vmin.f32 %v1208_v41, %v613_v7  ;;  %v819_v18 = vmax.f32 %v1208_v41, %v613_v7  ;;  %v1278_v19 = vadd.f32 %v1196_v30, %v578_v8  ;;  %661 = vst [vmem:[%s1203_s20 + $0xb0] sm:$0xff] %v1268_v10 }
 0x107   : > { %643 = vst [vmem:[%s1203_s20 + $0x20] sm:$0xff] %v611_v14  ;;  %v674_v21 = vadd.f32 %v673_v15, %v611_v14  ;;  %v713_v22 = vmul.f32 %v611_v14, %v611_v14  ;;  %v743_v23 = vadd.f32 %v742_v13, %v712_v1  ;;  %v779_v24 = vmin.f32 %v1216_v47, %v611_v14 }
 0x108   : > { %v817_v25 = vmax.f32 %v1216_v47, %v611_v14  ;;  %646 = vst [vmem:[%s1203_s20 + $0x38] sm:$0xff] %v1278_v19  ;;  %v782_v26 = vmin.f32 %v1226_v51, %v1278_v19  ;;  %v820_v27 = vmax.f32 %v1226_v51, %v1278_v19  ;;  %v612_v31 = vadd.f32 %v1196_v30, %v576_v16 }
 0x109   : > { %v744_v28 = vadd.f32 %v743_v23, %v713_v22  ;;  %v1028_v32 = vpop.f32.mrb[8].mxu0  ;;  %v1294_v33 = vadd.f32 %v1196_v30, %v591_v11  ;;  %v1044_v34 = vpop.f32.mrb[8].mxu1  ;;  %v715_v35 = vmul.f32 %v613_v7, %v613_v7  ;;  %v1298_v38 = vadd.f32 %v1196_v30, %v594_v20 }
 0x10a   : > { %v581_v36 = vmul.f32 %v1028_v32, %v1193_v29  ;;  %v471_v37 = vpop.f32.mrb[9].mxu0  ;;  %v535_v39 = vpop.f32.mrb[9].mxu1  ;;  %644 = vst [vmem:[%s1203_s20 + $0x28] sm:$0xff] %v612_v31  ;;  %v675_v40 = vadd.f32 %v674_v21, %v612_v31  ;;  %v714_v41 = vmul.f32 %v612_v31, %v612_v31  ;;  %v780_v42 = vmin.f32 %v1236_v53, %v612_v31 }
 0x10b   : > { %v818_v43 = vmax.f32 %v1236_v53, %v612_v31  ;;  %v1029_v45 = vpop.f32.mrb[10].mxu0  ;;  %659 = vst [vmem:[%s1203_s20 + $0xa0] sm:$0xff] %v1294_v33  ;;  %v1305_v46 = vpop.f32.mrb[10].mxu1  ;;  %v579_v48 = vmul.f32 %v1193_v29, %v471_v37  ;;  %662 = vst [vmem:[%s1203_s20 + $0xb8] sm:$0xff] %v1298_v38  ;;  %v592_v55 = vmul.f32 %v1193_v29, %v522_v12 }
 0x10c   : > { %v617_v47 = vadd.f32 %v1196_v30, %v581_v36  ;;  %v582_v50 = vmul.f32 %v1029_v45, %v1193_v29  ;;  %v474_v51 = vpop.f32.mrb[11].mxu0  ;;  %v1313_v56 = vpop.f32.mrb[11].mxu1  ;;  %v716_v53 = vmul.f32 %v1278_v19, %v1278_v19  ;;  %v676_v57 = vadd.f32 %v675_v40, %v613_v7 }
 0x10d   : > { %v745_v58 = vadd.f32 %v744_v28, %v714_v41  ;;  %v580_v59 = vmul.f32 %v1193_v29, %v474_v51  ;;  %v615_v62 = vadd.f32 %v1196_v30, %v579_v48  ;;  %v597_v63 = vmul.f32 %v1044_v34, %v1193_v29 }
 0x10e   : > { %649 = vst [vmem:[%s1203_s20 + $0x50] sm:$0xff] %v617_v47  ;;  %v785_v60 = vmin.f32 %v781_v17, %v617_v47  ;;  %v823_v61 = vmax.f32 %v819_v18, %v617_v47  ;;  %v677_v1 = vadd.f32 %v676_v57, %v1278_v19  ;;  %v618_v2 = vadd.f32 %v1196_v30, %v582_v50 }
 0x10f   : > { %v746_v0 = vadd.f32 %v745_v58, %v715_v35  ;;  %v616_v3 = vadd.f32 %v1196_v30, %v580_v59  ;;  %647 = vst [vmem:[%s1203_s20 + $0x40] sm:$0xff] %v615_v62  ;;  %v717_v4 = vmul.f32 %v615_v62, %v615_v62  ;;  %v783_v5 = vmin.f32 %v779_v24, %v615_v62 }
 0x110   : > { %v821_v6 = vmax.f32 %v817_v25, %v615_v62  ;;  %v1326_v7 = vadd.f32 %v1196_v30, %v592_v55  ;;  %v678_v8 = vadd.f32 %v677_v1, %v615_v62  ;;  %650 = vst [vmem:[%s1203_s20 + $0x58] sm:$0xff] %v618_v2  ;;  %v786_v11 = vmin.f32 %v782_v26, %v618_v2 }
 0x111   : > { %v747_v9 = vadd.f32 %v746_v0, %v716_v53  ;;  %648 = vst [vmem:[%s1203_s20 + $0x48] sm:$0xff] %v616_v3  ;;  %v1032_v12 = vpop.f32.mrb[12].mxu0  ;;  %v1330_v13 = vpop.f32.mrb[12].mxu1  ;;  %v824_v14 = vmax.f32 %v820_v27, %v618_v2  ;;  %v718_v15 = vmul.f32 %v616_v3, %v616_v3  ;;  %v1332_v16 = vmin.f32 %v780_v42, %v616_v3 }
 0x112   : > { %v1334_v17 = vmax.f32 %v818_v43, %v616_v3  ;;  %v487_v18 = vpop.f32.mrb[13].mxu0  ;;  %660 = vst [vmem:[%s1203_s20 + $0xa8] sm:$0xff] %v1326_v7  ;;  %v1338_v19 = vpop.f32.mrb[13].mxu1  ;;  %v679_v21 = vadd.f32 %v678_v8, %v616_v3  ;;  %v585_v22 = vmul.f32 %v1032_v12, %v1193_v29  ;;  %v719_v26 = vmul.f32 %v617_v47, %v617_v47 }
 0x113   : > { %v748_v20 = vadd.f32 %v747_v9, %v717_v4  ;;  %v583_v23 = vmul.f32 %v1193_v29, %v487_v18  ;;  %v1033_v24 = vpop.f32.mrb[14].mxu0  ;;  %v1342_v25 = vpop.f32.mrb[14].mxu1  ;;  %v1346_v31 = vadd.f32 %v1196_v30, %v597_v63  ;;  %v595_v32 = vmul.f32 %v1193_v29, %v535_v39 }
 0x114   : > { %v586_v27 = vmul.f32 %v1033_v24, %v1193_v29  ;;  %v490_v28 = vpop.f32.mrb[15].mxu0  ;;  %v1349_v34 = vpop.f32.mrb[15].mxu1  ;;  %v680_v35 = vadd.f32 %v679_v21, %v617_v47  ;;  %v621_v37 = vadd.f32 %v1196_v30, %v585_v22  ;;  %v720_v41 = vmul.f32 %v618_v2, %v618_v2 }
 0x115   : > { %v749_v36 = vadd.f32 %v748_v20, %v718_v15  ;;  %v619_v40 = vadd.f32 %v1196_v30, %v583_v23  ;;  %v1355_v42 = vmul.f32 %v1220_v49, %v1220_v49  ;;  %665 = vst [vmem:[%s1203_s20 + $0xd0] sm:$0xff] %v1346_v31  ;;  %v1361_v39 = vadd.f32 %v1196_v30, %v595_v32 }
 0x116   : > { %v622_v43 = vadd.f32 %v1196_v30, %v586_v27  ;;  %653 = vst [vmem:[%s1203_s20 + $0x70] sm:$0xff] %v621_v37  ;;  %v789_v47 = vmin.f32 %v785_v60, %v621_v37  ;;  %v827_v48 = vmax.f32 %v823_v61, %v621_v37  ;;  %v584_v50 = vmul.f32 %v1193_v29, %v490_v28 }
 0x117   : > { %v750_v45 = vadd.f32 %v749_v36, %v719_v26  ;;  %651 = vst [vmem:[%s1203_s20 + $0x60] sm:$0xff] %v619_v40  ;;  %v681_v51 = vadd.f32 %v680_v35, %v618_v2  ;;  %v721_v55 = vmul.f32 %v619_v40, %v619_v40  ;;  %v787_v53 = vmin.f32 %v783_v5, %v619_v40 }
 0x118   : > { %v825_v57 = vmax.f32 %v821_v6, %v619_v40  ;;  %654 = vst [vmem:[%s1203_s20 + $0x78] sm:$0xff] %v622_v43  ;;  %663 = vst [vmem:[%s1203_s20 + $0xc0] sm:$0xff] %v1361_v39  ;;  %v723_v58 = vmul.f32 %v621_v37, %v621_v37  ;;  %v793_v59 = vmin.f32 %v789_v47, %v1212_v44 }
 0x119   : > { %v831_v62 = vmax.f32 %v827_v48, %v1212_v44  ;;  %v751_v63 = vadd.f32 %v750_v45, %v720_v41  ;;  %v682_v0 = vadd.f32 %v681_v51, %v619_v40  ;;  %v791_v60 = vmin.f32 %v787_v53, %v1220_v49 }
 0x11a   : > { %v829_v61 = vmax.f32 %v825_v57, %v1220_v49  ;;  %v790_v1 = vmin.f32 %v786_v11, %v622_v43  ;;  %v797_v2 = vmin.f32 %v793_v59, %v1268_v10  ;;  %v828_v5 = vmax.f32 %v824_v14, %v622_v43 }
 0x11b   : > { %v835_v3 = vmax.f32 %v831_v62, %v1268_v10  ;;  %v752_v4 = vadd.f32 %v751_v63, %v721_v55  ;;  %v795_v6 = vmin.f32 %v791_v60, %v1294_v33  ;;  %v620_v12 = vadd.f32 %v1196_v30, %v584_v50 }
 0x11c   : > { %v833_v8 = vmax.f32 %v829_v61, %v1294_v33  ;;  %v794_v9 = vmin.f32 %v790_v1, %v1231_v52  ;;  %v724_v15 = vmul.f32 %v622_v43, %v622_v43  ;;  %v832_v18 = vmax.f32 %v828_v5, %v1231_v52 }
 0x11d   : > { %v1381_v20 = vmin.f32 %v797_v2, %v1346_v31  ;;  %v1384_v11 = vmax.f32 %v835_v3, %v1346_v31  ;;  %652 = vst [vmem:[%s1203_s20 + $0x68] sm:$0xff] %v620_v12  ;;  %v683_v14 = vadd.f32 %v682_v0, %v620_v12  ;;  %v722_v22 = vmul.f32 %v620_v12, %v620_v12 }
 0x11e   : > { %v798_v21 = vmin.f32 %v794_v9, %v1298_v38  ;;  %v788_v23 = vmin.f32 %v1332_v16, %v620_v12  ;;  %v836_v24 = vmax.f32 %v832_v18, %v1298_v38  ;;  %v826_v26 = vmax.f32 %v1334_v17, %v620_v12 }
 0x11f   : > { %v799_v27 = vmin.f32 %v795_v6, %v1361_v39  ;;  %v837_v28 = vmax.f32 %v833_v8, %v1361_v39  ;;  %v684_v32 = vadd.f32 %v683_v14, %v621_v37  ;;  %v753_v35 = vadd.f32 %v752_v4, %v722_v22 }
 0x120   : > { %v792_v36 = vmin.f32 %v788_v23, %v1241_v54  ;;  %v598_v40 = vmul.f32 %v1305_v46, %v1193_v29  ;;  %v830_v41 = vmax.f32 %v826_v26, %v1241_v54  ;;  %v596_v16 = vmul.f32 %v1193_v29, %v1313_v56 }
 0x121   : > { %v601_v17 = vmul.f32 %v1330_v13, %v1193_v29  ;;  %v599_v45 = vmul.f32 %v1193_v29, %v1338_v19  ;;  %v685_v37 = vadd.f32 %v684_v32, %v622_v43  ;;  %v754_v47 = vadd.f32 %v753_v35, %v723_v58 }
 0x122   : > { %v796_v48 = vmin.f32 %v792_v36, %v1326_v7  ;;  %v1405_v46 = vadd.f32 %v1196_v30, %v598_v40  ;;  %v834_v50 = vmax.f32 %v830_v41, %v1326_v7  ;;  %v1409_v56 = vadd.f32 %v1196_v30, %v596_v16 }
 0x123   : > { %v1412_v51 = vadd.f32 %v1196_v30, %v601_v17  ;;  %v1415_v13 = vadd.f32 %v1196_v30, %v599_v45  ;;  %v686_v19 = vadd.f32 %v685_v37, %v1220_v49  ;;  %v755_v43 = vadd.f32 %v754_v47, %v724_v15 }
 0x124   : > { %666 = vst [vmem:[%s1203_s20 + $0xd8] sm:$0xff] %v1405_v46  ;;  %v802_v55 = vmin.f32 %v798_v21, %v1405_v46  ;;  %v840_v53 = vmax.f32 %v836_v24, %v1405_v46  ;;  %664 = vst [vmem:[%s1203_s20 + $0xc8] sm:$0xff] %v1409_v56  ;;  %v800_v57 = vmin.f32 %v796_v48, %v1409_v56 }
 0x125   : > { %v838_v58 = vmax.f32 %v834_v50, %v1409_v56  ;;  %669 = vst [vmem:[%s1203_s20 + $0xf0] sm:$0xff] %v1412_v51  ;;  %667 = vst [vmem:[%s1203_s20 + $0xe0] sm:$0xff] %v1415_v13  ;;  %v726_v49 = vmul.f32 %v1241_v54, %v1241_v54  ;;  %v756_v59 = vadd.f32 %v755_v43, %v1355_v42 }
 0x126   : > { %v687_v62 = vadd.f32 %v686_v19, %v1241_v54  ;;  %v805_v63 = vmin.f32 %v1381_v20, %v1412_v51  ;;  %v727_v0 = vmul.f32 %v1212_v44, %v1212_v44  ;;  %v843_v60 = vmax.f32 %v1384_v11, %v1412_v51 }
 0x127   : > { %v803_v61 = vmin.f32 %v799_v27, %v1415_v13  ;;  %v841_v1 = vmax.f32 %v837_v28, %v1415_v13  ;;  %v757_v42 = vadd.f32 %v756_v59, %v726_v49  ;;  %v602_v54 = vmul.f32 %v1342_v25, %v1193_v29 }
 0x128   : > { %v688_v2 = vadd.f32 %v687_v62, %v1212_v44  ;;  %v600_v3 = vmul.f32 %v1193_v29, %v1349_v34  ;;  %v728_v4 = vmul.f32 %v1231_v52, %v1231_v52  ;;  %v729_v5 = vmul.f32 %v1294_v33, %v1294_v33 }
 0x129   : > { %v758_v8 = vadd.f32 %v757_v42, %v727_v0  ;;  %v1453_v9 = vadd.f32 %v1196_v30, %v602_v54  ;;  %v730_v20 = vmul.f32 %v1326_v7, %v1326_v7  ;;  %v731_v22 = vmul.f32 %v1268_v10, %v1268_v10 }
 0x12a   : > { %v689_v6 = vadd.f32 %v688_v2, %v1231_v52  ;;  %v636_v44 = vadd.f32 %v1196_v30, %v600_v3  ;;  %v732_v28 = vmul.f32 %v1298_v38, %v1298_v38  ;;  %v733_v35 = vmul.f32 %v1361_v39, %v1361_v39 }
 0x12b   : > { %v759_v25 = vadd.f32 %v758_v8, %v728_v4  ;;  %670 = vst [vmem:[%s1203_s20 + $0xf8] sm:$0xff] %v1453_v9  ;;  %v806_v29 = vmin.f32 %v802_v55, %v1453_v9  ;;  %v844_v34 = vmax.f32 %v840_v53, %v1453_v9  ;;  %v734_v47 = vmul.f32 %v1409_v56, %v1409_v56 }
 0x12c   : > { %v690_v12 = vadd.f32 %v689_v6, %v1294_v33  ;;  %668 = vst [vmem:[%s1203_s20 + $0xe8] sm:$0xff] %v636_v44  ;;  %v804_v15 = vmin.f32 %v800_v57, %v636_v44  ;;  %v842_v18 = vmax.f32 %v838_v58, %v636_v44  ;;  %v736_v53 = vmul.f32 %v1405_v46, %v1405_v46 }
 0x12d   : > { %v760_v11 = vadd.f32 %v759_v25, %v729_v5  ;;  %v808_v30 = vmin.f32 %v805_v63, %v806_v29  ;;  %v846_v21 = vmax.f32 %v843_v60, %v844_v34 }
 0x12e   : > { %v691_v52 = vadd.f32 %v690_v12, %v1326_v7  ;;  %v807_v33 = vmin.f32 %v803_v61, %v804_v15  ;;  %v845_v14 = vmax.f32 %v841_v1, %v842_v18  ;;  %v738_v1 = vmul.f32 %v636_v44, %v636_v44 }
 0x12f   : > { %v761_v24 = vadd.f32 %v760_v11, %v730_v20 }
 0x130   : > { %v692_v23 = vadd.f32 %v691_v52, %v1268_v10  ;;  %v809_v26 = vmin.f32 %v807_v33, %v808_v30  ;;  %v847_v27 = vmax.f32 %v845_v14, %v846_v21 }
 0x131   : > { %v762_v32 = vadd.f32 %v761_v24, %v731_v22 }
 0x132   : > { %v693_v7 = vadd.f32 %v692_v23, %v1298_v38  ;;  %v810_v36 = vrot.slane %v809_v26, 4  ;;  %v848_v40 = vrot.slane %v847_v27, 4  ;;  %v735_v38 = vmul.f32 %v1346_v31, %v1346_v31 }
 0x133   : > { %v763_v16 = vadd.f32 %v762_v32, %v732_v28 }
 0x134   : > { %v694_v41 = vadd.f32 %v693_v7, %v1361_v39  ;;  %v811_v10 = vmin.f32 %v809_v26, %v810_v36  ;;  %v849_v17 = vmax.f32 %v847_v27, %v848_v40 }
 0x135   : > { %v764_v45 = vadd.f32 %v763_v16, %v733_v35 }
 0x136   : > { %v695_v37 = vadd.f32 %v694_v41, %v1409_v56  ;;  %v812_v48 = vrot.slane %v811_v10, 2  ;;  %v850_v50 = vrot.slane %v849_v17, 2  ;;  %v737_v56 = vmul.f32 %v1415_v13, %v1415_v13 }
 0x137   : > { %v765_v43 = vadd.f32 %v764_v45, %v734_v47 }
 0x138   : > { %v696_v19 = vadd.f32 %v695_v37, %v1346_v31  ;;  %v813_v39 = vmin.f32 %v811_v10, %v812_v48  ;;  %v851_v55 = vmax.f32 %v849_v17, %v850_v50 }
 0x139   : > { %v766_v57 = vadd.f32 %v765_v43, %v735_v38 }
 0x13a   : > { %v697_v58 = vadd.f32 %v696_v19, %v1405_v46  ;;  %v814_v49 = vrot.slane %v813_v39, 1  ;;  %v852_v59 = vrot.slane %v851_v55, 1  ;;  %v739_v46 = vmul.f32 %v1412_v51, %v1412_v51 }
 0x13b   : > { %v767_v63 = vadd.f32 %v766_v57, %v736_v53 }
 0x13c   : > { %v698_v62 = vadd.f32 %v697_v58, %v1415_v13  ;;  %v815_v31 = vmin.f32 %v813_v39, %v814_v49  ;;  %v853_v0 = vmax.f32 %v851_v55, %v852_v59  ;;  %v740_v13 = vmul.f32 %v1453_v9, %v1453_v9 }
 0x13d   : > { %v768_v60 = vadd.f32 %v767_v63, %v737_v56 }
 0x13e   : > { %v699_v61 = vadd.f32 %v698_v62, %v636_v44  ;;  %816 = vst [vmem:[%s211_s16 + $0x2] sm:$0x1] %v815_v31  ;;  %854 = vst [vmem:[%s211_s16 + $0x3] sm:$0x1] %v853_v0 }
 0x13f   : > { %v769_v42 = vadd.f32 %v768_v60, %v738_v1 }
 0x140   : > { %v700_v2 = vadd.f32 %v699_v61, %v1412_v51 }
 0x141   : > { %v770_v3 = vadd.f32 %v769_v42, %v739_v46 }
 0x142   : > { %v701_v54 = vadd.f32 %v700_v2, %v1453_v9 }
 0x143   : > { %v771_v5 = vadd.f32 %v770_v3, %v740_v13 }
 0x144   : > { %v702_v4 = vrot.slane %v701_v54, 4 }
 0x145   : > { %v772_v8 = vrot.slane %v771_v5, 4 }
 0x146   : > { %v703_v6 = vadd.f32 %v702_v4, %v701_v54 }
 0x147   : > { %v773_v44 = vadd.f32 %v772_v8, %v771_v5 }
 0x148   : > { %v704_v12 = vrot.slane %v703_v6, 2 }
 0x149   : > { %v774_v29 = vrot.slane %v773_v44, 2 }
 0x14a   : > { %v705_v25 = vadd.f32 %v704_v12, %v703_v6 }
 0x14b   : > { %v775_v15 = vadd.f32 %v774_v29, %v773_v44 }
 0x14c   : > { %v706_v34 = vrot.slane %v705_v25, 1 }
 0x14d   : > { %v776_v52 = vrot.slane %v775_v15, 1 }
 0x14e   : > { %v707_v18 = vadd.f32 %v706_v34, %v705_v25 }
 0x14f   : > { %v777_v51 = vadd.f32 %v776_v52, %v775_v15 }
 0x150   : > { %708 = vst [vmem:[%s211_s16] sm:$0x1] %v707_v18 }
 0x151   : > { %778 = vst [vmem:[%s211_s16 + $0x1] sm:$0x1] %v777_v51 }
 0x152 PF: > { %s15_s15 = sadd.s32 1, %s1104_s15  }
 0x153   : > { %p12_p5 = scmp.ge.s32.totalorder %s15_s15, 4  }
 0x155   :  { %14 = sbr.rel (!%p12_p5) target bundleno = 1 (0x1), region = 74 }

</bundles_post_ra>
